<compile_context>
chip_gen: v6e
topology: v6e:2x2x1
jax: 0.10.0
libtpu: 0.0.40
codegen_flags: <defaults>
</compile_context>

<pallas_src>
import functools

import jax
import jax.numpy as jnp
from jax import lax
from jax.experimental import pallas as pl
from jax.experimental.pallas import tpu as pltpu

H1 = 128          # hidden width of layer 1
H2 = 64           # hidden width of layer 2
F_PAD = 128       # input feature dim padded 13 -> 128 (aligned, unmasked K loads)

# Rows of the batch processed per grid step.  256 keeps the demo fast; for
# large datasets use 4K-16K (stay under v7x's 32 MiB default scoped VMEM;
# v5e/v6e's 128 MiB VMEM tolerates larger tiles).
TILE_M = 256


def _mlp_kernel(x_ref, w1_ref, b1_ref, w2_ref, b2_ref, w3_ref, b3_ref, o_ref):
    """One batch tile of the fused MLP.

    x_ref : [TILE_M, F_PAD] bf16   (features zero-padded 13 -> 128)
    w1_ref: [F_PAD, 128]    bf16   (rows >= input_size are zero)
    b1_ref: [1, 128]        f32
    w2_ref: [128, 64]       bf16
    b2_ref: [1, 64]         f32
    w3_ref: [1, 64]         bf16   (PyTorch layer-3 weight, [out=1, in=64])
    b3_ref: [1]             f32    (SMEM scalar)
    o_ref : [1, TILE_M]     f32    (transposed, lane-dense output row)
    """
    # Layer 1: Linear(13 -> 128) + ReLU.  bf16 MXU matmul, f32 accumulate.
    h1 = jnp.dot(x_ref[...], w1_ref[...], preferred_element_type=jnp.float32)
    h1 = jnp.maximum(h1 + b1_ref[...], 0.0)

    # Dropout(0.2): identity at inference time (no-op).

    # Layer 2: Linear(128 -> 64) + ReLU.
    h2 = jnp.dot(h1.astype(jnp.bfloat16), w2_ref[...],
                 preferred_element_type=jnp.float32)
    h2 = jnp.maximum(h2 + b2_ref[...], 0.0)

    # Layer 3: Linear(64 -> 1), computed transposed (y^T = w3 @ h2^T) so the
    # result is produced directly as a lane-dense [1, TILE_M] row — no masked
    # single-lane stores and no [TILE_M,1] -> [1,TILE_M] relayout needed.
    y = lax.dot_general(
        w3_ref[...], h2.astype(jnp.bfloat16),
        dimension_numbers=(((1,), (1,)), ((), ())),
        preferred_element_type=jnp.float32)          # [1, TILE_M]
    o_ref[...] = y + b3_ref[0]


@functools.partial(jax.jit, static_argnames=("tile_m",))
def boston_model_forward(x, params, *, tile_m=TILE_M):
    """x: [batch, input_size] float32.  Returns [batch, 1] float32."""
    batch, in_features = x.shape
    num_tiles = pl.cdiv(batch, tile_m)
    batch_padded = num_tiles * tile_m

    bf = jnp.bfloat16
    # Pad features -> F_PAD and batch -> multiple of tile_m; cast MXU operands
    # to bf16 (accumulation inside the kernel is f32, so the math matches a
    # bf16-input / f32-accumulate reference).
    xp = jnp.zeros((batch_padded, F_PAD), bf)
    xp = xp.at[:batch, :in_features].set(x.astype(bf))

    w1 = jnp.zeros((F_PAD, H1), bf).at[:in_features, :].set(params["w1"].astype(bf))
    b1 = params["b1"].reshape(1, H1).astype(jnp.float32)
    w2 = params["w2"].astype(bf)                          # [128, 64]
    b2 = params["b2"].reshape(1, H2).astype(jnp.float32)
    w3 = params["w3"].reshape(1, H2).astype(bf)           # [1, 64]
    b3 = params["b3"].reshape(1).astype(jnp.float32)      # SMEM scalar

    out_t = pl.pallas_call(
        _mlp_kernel,
        out_shape=jax.ShapeDtypeStruct((1, batch_padded), jnp.float32),
        grid=(num_tiles,),
        in_specs=[
            pl.BlockSpec((tile_m, F_PAD), lambda i: (i, 0)),   # x tile (streamed)
            pl.BlockSpec((F_PAD, H1), lambda i: (0, 0)),       # w1 (resident)
            pl.BlockSpec((1, H1), lambda i: (0, 0)),           # b1
            pl.BlockSpec((H1, H2), lambda i: (0, 0)),          # w2
            pl.BlockSpec((1, H2), lambda i: (0, 0)),           # b2
            pl.BlockSpec((1, H2), lambda i: (0, 0)),           # w3
            pl.BlockSpec(memory_space=pltpu.MemorySpace.SMEM), # b3 scalar
        ],
        out_specs=pl.BlockSpec((1, tile_m), lambda i: (0, i)),
        compiler_params=pltpu.CompilerParams(
            dimension_semantics=("parallel",)),
    )(xp, w1, b1, w2, b2, w3, b3)

    # [1, batch_padded] -> [batch, 1]
    return out_t[0, :batch].reshape(batch, 1)


def init_params(key, input_size):
    """Deterministic init (PyTorch-style uniform(-1/sqrt(fan_in), 1/sqrt(fan_in)))."""
    def linear(key, fan_in, fan_out):
        kw, kb = jax.random.split(key)
        bound = 1.0 / jnp.sqrt(float(fan_in))
        w = jax.random.uniform(kw, (fan_in, fan_out), jnp.float32, -bound, bound)
        b = jax.random.uniform(kb, (1, fan_out), jnp.float32, -bound, bound)
        return w, b

    k1, k2, k3 = jax.random.split(key, 3)
    w1, b1 = linear(k1, input_size, H1)
    w2, b2 = linear(k2, H1, H2)
    w3, b3 = linear(k3, H2, 1)
    return {"w1": w1, "b1": b1, "w2": w2, "b2": b2, "w3": w3, "b3": b3}


def reference_forward(x, p):
    """Matched-precision plain-JAX reference (bf16 MXU inputs, f32 accumulate)."""
    bf = jnp.bfloat16
    h1 = jnp.maximum(
        jnp.dot(x.astype(bf), p["w1"].astype(bf),
                preferred_element_type=jnp.float32) + p["b1"], 0.0)
    h2 = jnp.maximum(
        jnp.dot(h1.astype(bf), p["w2"].astype(bf),
                preferred_element_type=jnp.float32) + p["b2"], 0.0)
    return jnp.dot(h2.astype(bf), p["w3"].astype(bf),
                   preferred_element_type=jnp.float32) + p["b3"]


if __name__ == "__main__":
    key = jax.random.PRNGKey(0)
    k_params, k_x = jax.random.split(key)

    input_size = 13   # Boston housing feature count
    batch = 300       # not tile-aligned -> exercises padding and a 2-step grid

    params = init_params(k_params, input_size)
    x = jax.random.normal(k_x, (batch, input_size), dtype=jnp.float32)

    out = jax.block_until_ready(boston_model_forward(x, params))
    ref = reference_forward(x, params)

    assert out.shape == (batch, 1), out.shape
    assert jnp.allclose(out, ref, atol=1e-3, rtol=1e-3), "mismatch vs reference"

    print("KERNEL_OK")
</pallas_src>

<mosaic_0001>
module attributes {stable_mosaic.version = 11 : i64} {
  func.func @_mlp_kernel(%arg0: i32, %arg1: memref<256x128xbf16, #tpu.memory_space<vmem>>, %arg2: memref<128x128xbf16, #tpu.memory_space<vmem>>, %arg3: memref<1x128xf32, #tpu.memory_space<vmem>>, %arg4: memref<128x64xbf16, #tpu.memory_space<vmem>>, %arg5: memref<1x64xf32, #tpu.memory_space<vmem>>, %arg6: memref<1x64xbf16, #tpu.memory_space<vmem>>, %arg7: memref<1xf32, #tpu.memory_space<smem>>, %arg8: memref<1x256xf32, #tpu.memory_space<vmem>>) attributes {dimension_semantics = [#tpu.dimension_semantics<parallel>], iteration_bounds = array<i64: 2>, scalar_prefetch = 0 : i64, scratch_operands = 0 : i64, tpu.core_type = #tpu.core_type<tc>, window_params = [{transform_indices = @transform_0, window_bounds = array<i64: 256, 128>}, {pipeline_mode = #tpu.pipeline_mode<synchronous>, transform_indices = @transform_1, window_bounds = array<i64: 128, 128>}, {pipeline_mode = #tpu.pipeline_mode<synchronous>, transform_indices = @transform_2, window_bounds = array<i64: 1, 128>}, {pipeline_mode = #tpu.pipeline_mode<synchronous>, transform_indices = @transform_3, window_bounds = array<i64: 128, 64>}, {pipeline_mode = #tpu.pipeline_mode<synchronous>, transform_indices = @transform_4, window_bounds = array<i64: 1, 64>}, {pipeline_mode = #tpu.pipeline_mode<synchronous>, transform_indices = @transform_5, window_bounds = array<i64: 1, 64>}, {transform_indices = @transform_6, window_bounds = array<i64: 1>}, {transform_indices = @transform_7, window_bounds = array<i64: 1, 256>}]} {
    %c0 = arith.constant 0 : index
    %c0_0 = arith.constant 0 : index
    %0 = vector.load %arg1[%c0, %c0_0] : memref<256x128xbf16, #tpu.memory_space<vmem>>, vector<256x128xbf16>
    %c0_1 = arith.constant 0 : index
    %c0_2 = arith.constant 0 : index
    %1 = vector.load %arg2[%c0_1, %c0_2] : memref<128x128xbf16, #tpu.memory_space<vmem>>, vector<128x128xbf16>
    %cst = arith.constant dense<0.000000e+00> : vector<256x128xf32>
    %2 = tpu.matmul %0, %1, %cst {dimension_numbers = #tpu.dot_dimension_numbers<[1], [0], [0], [1], [0, 0, 1, 1], [], []>} : vector<256x128xbf16>, vector<128x128xbf16>, vector<256x128xf32> -> vector<256x128xf32>
    %c0_3 = arith.constant 0 : index
    %c0_4 = arith.constant 0 : index
    %3 = vector.load %arg3[%c0_3, %c0_4] : memref<1x128xf32, #tpu.memory_space<vmem>>, vector<1x128xf32>
    %4 = vector.broadcast %3 : vector<1x128xf32> to vector<256x128xf32>
    %5 = arith.addf %2, %4 : vector<256x128xf32>
    %cst_5 = arith.constant 0.000000e+00 : f32
    %6 = vector.broadcast %cst_5 : f32 to vector<256x128xf32>
    %7 = arith.maximumf %5, %6 : vector<256x128xf32>
    %8 = arith.truncf %7 : vector<256x128xf32> to vector<256x128xbf16>
    %c0_6 = arith.constant 0 : index
    %c0_7 = arith.constant 0 : index
    %9 = vector.load %arg4[%c0_6, %c0_7] : memref<128x64xbf16, #tpu.memory_space<vmem>>, vector<128x64xbf16>
    %cst_8 = arith.constant dense<0.000000e+00> : vector<256x64xf32>
    %10 = tpu.matmul %8, %9, %cst_8 {dimension_numbers = #tpu.dot_dimension_numbers<[1], [0], [0], [1], [0, 0, 1, 1], [], []>} : vector<256x128xbf16>, vector<128x64xbf16>, vector<256x64xf32> -> vector<256x64xf32>
    %c0_9 = arith.constant 0 : index
    %c0_10 = arith.constant 0 : index
    %11 = vector.load %arg5[%c0_9, %c0_10] : memref<1x64xf32, #tpu.memory_space<vmem>>, vector<1x64xf32>
    %12 = vector.broadcast %11 : vector<1x64xf32> to vector<256x64xf32>
    %13 = arith.addf %10, %12 : vector<256x64xf32>
    %cst_11 = arith.constant 0.000000e+00 : f32
    %14 = vector.broadcast %cst_11 : f32 to vector<256x64xf32>
    %15 = arith.maximumf %13, %14 : vector<256x64xf32>
    %c0_12 = arith.constant 0 : index
    %c0_13 = arith.constant 0 : index
    %16 = vector.load %arg6[%c0_12, %c0_13] : memref<1x64xbf16, #tpu.memory_space<vmem>>, vector<1x64xbf16>
    %17 = arith.truncf %15 : vector<256x64xf32> to vector<256x64xbf16>
    %cst_14 = arith.constant dense<0.000000e+00> : vector<1x256xf32>
    %18 = tpu.matmul %16, %17, %cst_14 {dimension_numbers = #tpu.dot_dimension_numbers<[1], [1], [0], [0], [0, 0, 1, 0], [], []>} : vector<1x64xbf16>, vector<256x64xbf16>, vector<1x256xf32> -> vector<1x256xf32>
    %c0_15 = arith.constant 0 : index
    %19 = memref.load %arg7[%c0_15] : memref<1xf32, #tpu.memory_space<smem>>
    %20 = vector.broadcast %19 : f32 to vector<1x256xf32>
    %21 = arith.addf %18, %20 : vector<1x256xf32>
    %c0_16 = arith.constant 0 : index
    %c0_17 = arith.constant 0 : index
    %22 = vector.load %arg8[%c0_16, %c0_17] : memref<1x256xf32, #tpu.memory_space<vmem>>, vector<1x256xf32>
    tpu.vector_store %arg8[%c0_16, %c0_17], %21 {strides = array<i32>} : memref<1x256xf32, #tpu.memory_space<vmem>>, vector<1x256xf32>,
    return
  }
  func.func @transform_0(%arg0: i32) -> (i32, i32) {
    %c0_i32 = arith.constant 0 : i32
    %c0_i32_0 = arith.constant 0 : i32
    return %arg0, %c0_i32 : i32, i32
  }
  func.func @transform_1(%arg0: i32) -> (i32, i32) {
    %c0_i32 = arith.constant 0 : i32
    %c0_i32_0 = arith.constant 0 : i32
    %c0_i32_1 = arith.constant 0 : i32
    return %c0_i32, %c0_i32_0 : i32, i32
  }
  func.func @transform_2(%arg0: i32) -> (i32, i32) {
    %c0_i32 = arith.constant 0 : i32
    %c0_i32_0 = arith.constant 0 : i32
    %c0_i32_1 = arith.constant 0 : i32
    return %c0_i32, %c0_i32_0 : i32, i32
  }
  func.func @transform_3(%arg0: i32) -> (i32, i32) {
    %c0_i32 = arith.constant 0 : i32
    %c0_i32_0 = arith.constant 0 : i32
    %c0_i32_1 = arith.constant 0 : i32
    return %c0_i32, %c0_i32_0 : i32, i32
  }
  func.func @transform_4(%arg0: i32) -> (i32, i32) {
    %c0_i32 = arith.constant 0 : i32
    %c0_i32_0 = arith.constant 0 : i32
    %c0_i32_1 = arith.constant 0 : i32
    return %c0_i32, %c0_i32_0 : i32, i32
  }
  func.func @transform_5(%arg0: i32) -> (i32, i32) {
    %c0_i32 = arith.constant 0 : i32
    %c0_i32_0 = arith.constant 0 : i32
    %c0_i32_1 = arith.constant 0 : i32
    return %c0_i32, %c0_i32_0 : i32, i32
  }
  func.func @transform_6(%arg0: i32) -> i32 {
    %c0_i32 = arith.constant 0 : i32
    %c0_i32_0 = arith.constant 0 : i32
    return %c0_i32 : i32
  }
  func.func @transform_7(%arg0: i32) -> (i32, i32) {
    %c0_i32 = arith.constant 0 : i32
    %c0_i32_0 = arith.constant 0 : i32
    return %c0_i32, %arg0 : i32, i32
  }
}

</mosaic_0001>

<bundles_post_ra>
// kernel: boston_model_forward.1
= control target key start
LH: loop header
LB: loop body
LE: loop exit
PB: predicated region body
PF: predicated region fallthrough
CT: control target
= control target key end

     0   :  { %s1447_s26 = smov 0   ;;  %s1669_s0 = inlined_call_operand.vmem [shape: bf16[512,128], index: 0, kind: input, shape index: {}]   ;;  %s1670_s1 = inlined_call_operand.vmem [shape: bf16[128,128], index: 1, kind: input, shape index: {}]   ;;  %s1671_s2 = inlined_call_operand.vmem [shape: f32[1,128], index: 2, kind: input, shape index: {}]   ;;  %s1672_s3 = inlined_call_operand.vmem [shape: bf16[128,64], index: 3, kind: input, shape index: {}]   ;;  %s1673_s4 = inlined_call_operand.vmem [shape: f32[1,64], index: 4, kind: input, shape index: {}]   ;;  %s1674_s5 = inlined_call_operand.vmem [shape: bf16[1,64], index: 5, kind: input, shape index: {}]   ;;  %s1675_s6 = inlined_call_operand.<no memory space> [shape: f32[1], index: 6, kind: input, shape index: {}]   ;;  %s1676_s7 = inlined_call_operand.vmem [shape: f32[1,512], index: 7, kind: output, shape index: {}]  }
   0x1   :  { %12 = sst [smem:[#allocation2]] %s1675_s6 }
   0x2 LB: > { %s1139_s27 = sadd.s32 4294967295, %s1401_s26   ;;  %p1143_p0 = scmp.ge.s32.totalorder %s1401_s26, 1  ;;  %s1401_s26 = sphi %s1447_s26, %s18_s26  }
   0x3   : > { %p239_p1 = scmp.lt.s32.totalorder %s1401_s26, 3 }
   0x5   : > { %p240_p2 = pnand %p1143_p0, %p239_p1 }
   0x6   : > { %s1144_s6 = sshll.u32 (!%p240_p2), %s1139_s27, 5  ;;  %s971_s25 = sld [smem:[#allocation2]] (!%p240_p2) }
   0x7   : > { %243 = sbr.rel (%p240_p2) target bundleno = 778 (0x30a), region = 48  ;;  %p271_p3 = scmp.lt.s32.totalorder (!%p240_p2), %s1144_s6, 63 }
   0x8   : > { %s1146_s28 = sshll.u32 (!%p240_p2), %s1139_s27, 1 }
   0x9   : > { %p277_p4 = scmp.lt.s32.totalorder (!%p240_p2), %s1146_s28, 3 }
   0xc   : > { %v1363_v0 = vld [vmem:[%s1670_s1 + $0x38] sm:$0xff]   ;;  %v1364_v1 = vld [vmem:[%s1670_s1 + $0x30] sm:$0xff]   ;;  %s1678_s6 = smov (!%p271_p3, %s1144_s6), 63  ;;  %v1365_v2 = vld [vmem:[%s1670_s1 + $0x28] sm:$0xff]   ;;  %vm973_vm0 = vcmask 523264   ;;  %s1680_s28 = smov (!%p277_p4, %s1146_s28), 3 }
   0xd   : > { %1250 = vmatprep.subr.bf16.mxu0 %v1363_v0  ;;  %s1145_s11 = sshll.u32 %s1678_s6, 2  ;;  %v1366_v3 = vld [vmem:[%s1670_s1 + $0x20] sm:$0xff]   ;;  %v1367_v5 = vld [vmem:[%s1670_s1 + $0x18] sm:$0xff]   ;;  %v1368_v6 = vld [vmem:[%s1670_s1 + $0x10] sm:$0xff]   ;;  %s279_s30 = scalar_lea.vmem %s1676_s7, %s1680_s28 }
   0xe   : > { %1251 = vmatpush3.bf16.msra.mxu0 %v1363_v0  ;;  %s1469_s14 = scalar_lea.vmem %s1669_s0, %s1145_s11  ;;  %v1369_v7 = vld [vmem:[%s1670_s1 + $0x8] sm:$0xff]   ;;  %v1370_v8 = vld [vmem:[%s1670_s1] sm:$0xff]   ;;  %v1387_v9 = vld [vmem:[%s1672_s3 + $0x38] sm:$0xff]  }
   0xf   : > { %1252 = vmatprep.subr.bf16.mxu0 %v1364_v1  ;;  %v1371_v4 = vld [vmem:[%s1469_s14] sm:$0xff]   ;;  %v1388_v10 = vld [vmem:[%s1672_s3 + $0x30] sm:$0xff]   ;;  %1298 = vmatprep.subr.bf16.mxu1 %v1387_v9  ;;  %v1372_v11 = vld [vmem:[%s1469_s14 + $0x8] sm:$0xff]  }
  0x10   : > { %1266 = vmatprep.mubr.bf16.mxu0 %v1371_v4  ;;  %1299 = vmatpush3.bf16.msra.mxu1 %v1387_v9  ;;  %v1389_v12 = vld [vmem:[%s1672_s3 + $0x28] sm:$0xff]   ;;  %v1373_v13 = vld [vmem:[%s1469_s14 + $0x10] sm:$0xff]   ;;  %v1390_v14 = vld [vmem:[%s1672_s3 + $0x20] sm:$0xff]  }
  0x11   : > { %1300 = vmatprep.subr.bf16.mxu1 %v1388_v10  ;;  %v1391_v15 = vld [vmem:[%s1672_s3 + $0x18] sm:$0xff]   ;;  %v1375_v17 = vld [vmem:[%s1469_s14 + $0x20] sm:$0xff]   ;;  %v1376_v18 = vld [vmem:[%s1469_s14 + $0x28] sm:$0xff]  }
  0x12   : > { %1253 = vmatpush3.bf16.msra.mxu0 %v1364_v1  ;;  %v1374_v16 = vld [vmem:[%s1469_s14 + $0x18] sm:$0xff]   ;;  %v1377_v19 = vld [vmem:[%s1469_s14 + $0x30] sm:$0xff]   ;;  %v1379_v21 = vld [vmem:[%s1469_s14 + $0x40] sm:$0xff]  }
  0x13   : > { %1254 = vmatprep.subr.bf16.mxu0 %v1365_v2  ;;  %v1378_v20 = vld [vmem:[%s1469_s14 + $0x38] sm:$0xff]   ;;  %v1380_v22 = vld [vmem:[%s1469_s14 + $0x48] sm:$0xff]   ;;  %v1381_v23 = vld [vmem:[%s1469_s14 + $0x50] sm:$0xff]  }
  0x14   : > { %1301 = vmatpush3.bf16.msra.mxu1 %v1388_v10  ;;  %v1382_v24 = vld [vmem:[%s1469_s14 + $0x58] sm:$0xff]   ;;  %v1383_v25 = vld [vmem:[%s1469_s14 + $0x60] sm:$0xff]   ;;  %v1384_v26 = vld [vmem:[%s1469_s14 + $0x68] sm:$0xff]  }
  0x15   : > { %1302 = vmatprep.subr.bf16.mxu1 %v1389_v12  ;;  %v1385_v27 = vld [vmem:[%s1469_s14 + $0x70] sm:$0xff]   ;;  %v1386_v28 = vld [vmem:[%s1469_s14 + $0x78] sm:$0xff]   ;;  %v1393_v30 = vld [vmem:[%s1672_s3 + $0x8] sm:$0xff]  }
  0x16   : > { %1255 = vmatpush3.bf16.msra.mxu0 %v1365_v2  ;;  %v1392_v29 = vld [vmem:[%s1672_s3 + $0x10] sm:$0xff]   ;;  %v1394_v31 = vld [vmem:[%s1672_s3] sm:$0xff]  }
  0x17   : > { %1256 = vmatprep.subr.bf16.mxu0 %v1366_v3  ;;  %v1529_v34 = vld [vmem:[%s1671_s2] ss:$0 sm:$0xff] }
  0x18   : > { %1303 = vmatpush3.bf16.msra.mxu1 %v1389_v12 }
  0x19   : > { %1304 = vmatprep.subr.bf16.mxu1 %v1390_v14 }
  0x1a   : > { %1257 = vmatpush3.bf16.msra.mxu0 %v1366_v3 }
  0x1b   : > { %1258 = vmatprep.subr.bf16.mxu0 %v1367_v5 }
  0x1c   : > { %1305 = vmatpush3.bf16.msra.mxu1 %v1390_v14 }
  0x1d   : > { %1306 = vmatprep.subr.bf16.mxu1 %v1391_v15 }
  0x1e   : > { %1259 = vmatpush3.bf16.msra.mxu0 %v1367_v5 }
  0x1f   : > { %1260 = vmatprep.subr.bf16.mxu0 %v1368_v6 }
  0x20   : > { %1307 = vmatpush3.bf16.msra.mxu1 %v1391_v15 }
  0x21   : > { %1308 = vmatprep.subr.bf16.mxu1 %v1392_v29 }
  0x22   : > { %1261 = vmatpush3.bf16.msra.mxu0 %v1368_v6 }
  0x23   : > { %1262 = vmatprep.subr.bf16.mxu0 %v1369_v7 }
  0x24   : > { %1309 = vmatpush3.bf16.msra.mxu1 %v1392_v29 }
  0x25   : > { %1310 = vmatprep.subr.bf16.mxu1 %v1393_v30 }
  0x26   : > { %1263 = vmatpush3.bf16.msra.mxu0 %v1369_v7 }
  0x27   : > { %1264 = vmatprep.subr.bf16.mxu0 %v1370_v8 }
  0x28   : > { %1311 = vmatpush3.bf16.msra.mxu1 %v1393_v30 }
  0x29   : > { %1312 = vmatprep.subr.bf16.mxu1 %v1394_v31 }
  0x2a   : > { %1265 = vmatpush3.bf16.msra.mxu0 %v1370_v8 }
  0x2c   : > { %1313 = vmatpush3.bf16.msra.mxu1 %v1394_v31 }
  0x2d   : > { %1267 = vmatmul.mubr.bf16.vlgmr.msra.gmra.mxu0 %v1372_v11 }
  0x2e   : > { %1270 = vmatprep.mubr.bf16.mxu0 %v1373_v13 }
  0x35   : > { %1271 = vmatmul.mubr.bf16.gmra.mxu0 %v1374_v16 }
  0x36   : > { %1274 = vmatprep.mubr.bf16.mxu0 %v1375_v17 }
  0x3d   : > { %1275 = vmatmul.mubr.bf16.gmra.mxu0 %v1376_v18 }
  0x3e   : > { %1278 = vmatprep.mubr.bf16.mxu0 %v1377_v19 }
  0x45   : > { %1279 = vmatmul.mubr.bf16.gmra.mxu0 %v1378_v20 }
  0x46   : > { %1282 = vmatprep.mubr.bf16.mxu0 %v1379_v21 }
  0x4d   : > { %1283 = vmatmul.mubr.bf16.gmra.mxu0 %v1380_v22 }
  0x4e   : > { %1286 = vmatprep.mubr.bf16.mxu0 %v1381_v23 }
  0x55   : > { %1287 = vmatmul.mubr.bf16.gmra.mxu0 %v1382_v24 }
  0x56   : > { %1290 = vmatprep.mubr.bf16.mxu0 %v1383_v25 }
  0x5d   : > { %1291 = vmatmul.mubr.bf16.gmra.mxu0 %v1384_v26 }
  0x5e   : > { %1294 = vmatprep.mubr.bf16.mxu0 %v1385_v27 }
  0x65   : > { %1295 = vmatmul.mubr.bf16.gmra.mxu0 %v1386_v28 }
  0xed   : > { %v1268_v32 = vpop.f32.mrf.mxu0 }
  0xee   : > { %v524_v38 = vadd.f32 %v1268_v32, %v1529_v34 }
  0xef   : > { %v515_v33 = vpop.f32.mrf.mxu0 }
  0xf0   : > { %v516_v36 = vadd.f32 %v1529_v34, %v515_v33  ;;  %v644_v45 = vmax.f32 %v524_v38, 0.0 }
  0xf1   : > { %v1269_v35 = vpop.f32.mrf.mxu0 }
  0xf2   : > { %v527_v37 = vadd.f32 %v1269_v35, %v1529_v34  ;;  %v642_v43 = vmax.f32 %v516_v36, 0.0 }
  0xf3   : > { %v518_v39 = vpop.f32.mrf.mxu0 }
  0xf4   : > { %v519_v40 = vadd.f32 %v1529_v34, %v518_v39  ;;  %v645_v41 = vmax.f32 %v527_v37, 0.0 }
  0xf5   : > { %v1272_v42 = vpop.f32.mrf.mxu0 }
  0xf6   : > { %v643_v44 = vmax.f32 %v519_v40, 0.0  ;;  %v675_v48 = vpack.c.bf16 %v645_v41, %v644_v45  ;;  %v540_v52 = vadd.f32 %v1272_v42, %v1529_v34 }
  0xf7   : > { %v531_v46 = vpop.f32.mrf.mxu0 }
  0xf8   : > { %v674_v47 = vpack.c.bf16 %v643_v44, %v642_v43  ;;  %v532_v50 = vadd.f32 %v1529_v34, %v531_v46  ;;  %v648_v59 = vmax.f32 %v540_v52, 0.0 }
  0xf9   : > { %v1273_v49 = vpop.f32.mrf.mxu0 }
  0xfa   : > { %v543_v51 = vadd.f32 %v1273_v49, %v1529_v34  ;;  %1314 = vmatprep.mubr.bf16.mxu1 %v674_v47  ;;  %v646_v57 = vmax.f32 %v532_v50, 0.0 }
  0xfb   : > { %v534_v53 = vpop.f32.mrf.mxu0  ;;  %1315 = vmatmul.mubr.bf16.vlgmr.msra.gmra.mxu1 %v675_v48 }
  0xfc   : > { %v535_v54 = vadd.f32 %v1529_v34, %v534_v53  ;;  %v649_v55 = vmax.f32 %v543_v51, 0.0 }
  0xfd   : > { %v1276_v56 = vpop.f32.mrf.mxu0 }
  0xfe   : > { %v647_v58 = vmax.f32 %v535_v54, 0.0  ;;  %v677_v62 = vpack.c.bf16 %v649_v55, %v648_v59  ;;  %v556_v2 = vadd.f32 %v1276_v56, %v1529_v34 }
  0xff   : > { %v547_v60 = vpop.f32.mrf.mxu0 }
 0x100   : > { %v676_v61 = vpack.c.bf16 %v647_v58, %v646_v57  ;;  %v548_v0 = vadd.f32 %v1529_v34, %v547_v60  ;;  %v652_v9 = vmax.f32 %v556_v2, 0.0 }
 0x101   : > { %v1277_v63 = vpop.f32.mrf.mxu0 }
 0x102   : > { %v559_v1 = vadd.f32 %v1277_v63, %v1529_v34  ;;  %1318 = vmatprep.mubr.bf16.mxu1 %v676_v61  ;;  %v650_v7 = vmax.f32 %v548_v0, 0.0 }
 0x103   : > { %v550_v3 = vpop.f32.mrf.mxu0  ;;  %1319 = vmatmul.mubr.bf16.gmra.mxu1 %v677_v62 }
 0x104   : > { %v551_v4 = vadd.f32 %v1529_v34, %v550_v3  ;;  %v653_v5 = vmax.f32 %v559_v1, 0.0 }
 0x105   : > { %v1280_v6 = vpop.f32.mrf.mxu0 }
 0x106   : > { %v651_v8 = vmax.f32 %v551_v4, 0.0  ;;  %v679_v12 = vpack.c.bf16 %v653_v5, %v652_v9  ;;  %v572_v16 = vadd.f32 %v1280_v6, %v1529_v34 }
 0x107   : > { %v563_v10 = vpop.f32.mrf.mxu0 }
 0x108   : > { %v678_v11 = vpack.c.bf16 %v651_v8, %v650_v7  ;;  %v564_v14 = vadd.f32 %v1529_v34, %v563_v10  ;;  %v656_v23 = vmax.f32 %v572_v16, 0.0 }
 0x109   : > { %v1281_v13 = vpop.f32.mrf.mxu0 }
 0x10a   : > { %v575_v15 = vadd.f32 %v1281_v13, %v1529_v34  ;;  %1322 = vmatprep.mubr.bf16.mxu1 %v678_v11  ;;  %v654_v21 = vmax.f32 %v564_v14, 0.0 }
 0x10b   : > { %v566_v17 = vpop.f32.mrf.mxu0  ;;  %1323 = vmatmul.mubr.bf16.gmra.mxu1 %v679_v12 }
 0x10c   : > { %v567_v18 = vadd.f32 %v1529_v34, %v566_v17  ;;  %v657_v19 = vmax.f32 %v575_v15, 0.0 }
 0x10d   : > { %v1284_v20 = vpop.f32.mrf.mxu0 }
 0x10e   : > { %v655_v22 = vmax.f32 %v567_v18, 0.0  ;;  %v681_v26 = vpack.c.bf16 %v657_v19, %v656_v23  ;;  %v588_v30 = vadd.f32 %v1284_v20, %v1529_v34  ;;  %v1566_v18 = vld [vmem:[%s1674_s5] sm:$0x1] }
 0x10f   : > { %v579_v24 = vpop.f32.mrf.mxu0  ;;  %1248 = vmatprep.mubr.msk.bf16.mxu0 %vm973_vm0, %v1566_v18 }
 0x110   : > { %v680_v25 = vpack.c.bf16 %v655_v22, %v654_v21  ;;  %v580_v28 = vadd.f32 %v1529_v34, %v579_v24  ;;  %v660_v38 = vmax.f32 %v588_v30, 0.0 }
 0x111   : > { %v1285_v27 = vpop.f32.mrf.mxu0 }
 0x112   : > { %v591_v29 = vadd.f32 %v1285_v27, %v1529_v34  ;;  %1326 = vmatprep.mubr.bf16.mxu1 %v680_v25  ;;  %v658_v36 = vmax.f32 %v580_v28, 0.0 }
 0x113   : > { %v582_v31 = vpop.f32.mrf.mxu0  ;;  %1327 = vmatmul.mubr.bf16.gmra.mxu1 %v681_v26 }
 0x114   : > { %v583_v32 = vadd.f32 %v1529_v34, %v582_v31  ;;  %v661_v33 = vmax.f32 %v591_v29, 0.0 }
 0x115   : > { %v1288_v35 = vpop.f32.mrf.mxu0 }
 0x116   : > { %v659_v37 = vmax.f32 %v583_v32, 0.0  ;;  %v683_v41 = vpack.c.bf16 %v661_v33, %v660_v38  ;;  %v604_v45 = vadd.f32 %v1288_v35, %v1529_v34 }
 0x117   : > { %v595_v39 = vpop.f32.mrf.mxu0 }
 0x118   : > { %v682_v40 = vpack.c.bf16 %v659_v37, %v658_v36  ;;  %v596_v43 = vadd.f32 %v1529_v34, %v595_v39  ;;  %v664_v52 = vmax.f32 %v604_v45, 0.0 }
 0x119   : > { %v1289_v42 = vpop.f32.mrf.mxu0 }
 0x11a   : > { %v607_v44 = vadd.f32 %v1289_v42, %v1529_v34  ;;  %1330 = vmatprep.mubr.bf16.mxu1 %v682_v40  ;;  %v662_v50 = vmax.f32 %v596_v43, 0.0 }
 0x11b   : > { %v598_v46 = vpop.f32.mrf.mxu0  ;;  %1331 = vmatmul.mubr.bf16.gmra.mxu1 %v683_v41 }
 0x11c   : > { %v599_v47 = vadd.f32 %v1529_v34, %v598_v46  ;;  %v665_v48 = vmax.f32 %v607_v44, 0.0 }
 0x11d   : > { %v1292_v49 = vpop.f32.mrf.mxu0 }
 0x11e   : > { %v663_v51 = vmax.f32 %v599_v47, 0.0  ;;  %v685_v55 = vpack.c.bf16 %v665_v48, %v664_v52  ;;  %v620_v59 = vadd.f32 %v1292_v49, %v1529_v34 }
 0x11f   : > { %v611_v53 = vpop.f32.mrf.mxu0 }
 0x120   : > { %v684_v54 = vpack.c.bf16 %v663_v51, %v662_v50  ;;  %v612_v57 = vadd.f32 %v1529_v34, %v611_v53  ;;  %v668_v2 = vmax.f32 %v620_v59, 0.0 }
 0x121   : > { %v1293_v56 = vpop.f32.mrf.mxu0 }
 0x122   : > { %v623_v58 = vadd.f32 %v1293_v56, %v1529_v34  ;;  %1334 = vmatprep.mubr.bf16.mxu1 %v684_v54  ;;  %v666_v0 = vmax.f32 %v612_v57, 0.0 }
 0x123   : > { %v614_v60 = vpop.f32.mrf.mxu0  ;;  %1335 = vmatmul.mubr.bf16.gmra.mxu1 %v685_v55 }
 0x124   : > { %v615_v61 = vadd.f32 %v1529_v34, %v614_v60  ;;  %v669_v62 = vmax.f32 %v623_v58, 0.0 }
 0x125   : > { %v1296_v63 = vpop.f32.mrf.mxu0 }
 0x126   : > { %v667_v1 = vmax.f32 %v615_v61, 0.0  ;;  %v687_v5 = vpack.c.bf16 %v669_v62, %v668_v2  ;;  %v636_v9 = vadd.f32 %v1296_v63, %v1529_v34 }
 0x127   : > { %v627_v3 = vpop.f32.mrf.mxu0 }
 0x128   : > { %v686_v4 = vpack.c.bf16 %v667_v1, %v666_v0  ;;  %v628_v7 = vadd.f32 %v1529_v34, %v627_v3  ;;  %v672_v15 = vmax.f32 %v636_v9, 0.0 }
 0x129   : > { %v1297_v6 = vpop.f32.mrf.mxu0 }
 0x12a   : > { %v639_v8 = vadd.f32 %v1297_v6, %v1529_v34  ;;  %1338 = vmatprep.mubr.bf16.mxu1 %v686_v4  ;;  %v670_v13 = vmax.f32 %v628_v7, 0.0 }
 0x12b   : > { %v630_v10 = vpop.f32.mrf.mxu0  ;;  %1339 = vmatmul.mubr.bf16.gmra.mxu1 %v687_v5 }
 0x12c   : > { %v631_v11 = vadd.f32 %v1529_v34, %v630_v10  ;;  %v673_v12 = vmax.f32 %v639_v8, 0.0  ;;  %v1573_v34 = vld [vmem:[%s1673_s4] ss:$0 sm:$0xff] }
 0x12e   : > { %v671_v14 = vmax.f32 %v631_v11, 0.0  ;;  %v689_v17 = vpack.c.bf16 %v673_v12, %v672_v15 }
 0x130   : > { %v688_v16 = vpack.c.bf16 %v671_v14, %v670_v13 }
 0x132   : > { %1342 = vmatprep.mubr.bf16.mxu1 %v688_v16 }
 0x133   : > { %1343 = vmatmul.mubr.bf16.gmra.mxu1 %v689_v17 }
 0x1bb   : > { %v1316_v19 = vpop.f32.mrf.mxu1 }
 0x1bc   : > { %v804_v21 = vadd.f32 %v1316_v19, %v1573_v34 }
 0x1bd   : > { %v795_v20 = vpop.f32.mrf.mxu1 }
 0x1be   : > { %v796_v23 = vadd.f32 %v1573_v34, %v795_v20  ;;  %v924_v26 = vmax.f32 %v804_v21, 0.0 }
 0x1bf   : > { %v1317_v22 = vpop.f32.mrf.mxu1 }
 0x1c0   : > { %v807_v24 = vadd.f32 %v1317_v22, %v1573_v34  ;;  %v922_v30 = vmax.f32 %v796_v23, 0.0 }
 0x1c1   : > { %v798_v25 = vpop.f32.mrf.mxu1 }
 0x1c2   : > { %v925_v27 = vmax.f32 %v807_v24, 0.0  ;;  %v799_v28 = vadd.f32 %v1573_v34, %v798_v25 }
 0x1c3   : > { %v1320_v29 = vpop.f32.mrf.mxu1 }
 0x1c4   : > { %v1579_v31 = vpack.c.bf16 %v925_v27, %v924_v26  ;;  %v923_v32 = vmax.f32 %v799_v28, 0.0  ;;  %v820_v36 = vadd.f32 %v1320_v29, %v1573_v34 }
 0x1c5   : > { %v811_v33 = vpop.f32.mrf.mxu1 }
 0x1c6   : > { %v1581_v35 = vpack.c.bf16 %v923_v32, %v922_v30  ;;  %v812_v38 = vadd.f32 %v1573_v34, %v811_v33  ;;  %v928_v41 = vmax.f32 %v820_v36, 0.0 }
 0x1c7   : > { %v1321_v37 = vpop.f32.mrf.mxu1 }
 0x1c8   : > { %v823_v39 = vadd.f32 %v1321_v37, %v1573_v34  ;;  %v926_v45 = vmax.f32 %v812_v38, 0.0 }
 0x1c9   : > { %v814_v40 = vpop.f32.mrf.mxu1 }
 0x1ca   : > { %v929_v42 = vmax.f32 %v823_v39, 0.0  ;;  %v815_v43 = vadd.f32 %v1573_v34, %v814_v40 }
 0x1cb   : > { %v1587_v44 = vpop.f32.mrf.mxu1 }
 0x1cc   : > { %v1589_v46 = vpack.c.bf16 %v929_v42, %v928_v41  ;;  %v927_v47 = vmax.f32 %v815_v43, 0.0 }
 0x1cd   : > { %v1591_v48 = vpop.f32.mrf.mxu1 }
 0x1ce   : > { %v1593_v49 = vpack.c.bf16 %v927_v47, %v926_v45 }
 0x1cf   : > { %v1325_v50 = vpop.f32.mrf.mxu1 }
 0x1d0   : > { %v839_v45 = vadd.f32 %v1325_v50, %v1573_v34 }
 0x1d1   : > { %v1595_v51 = vpop.f32.mrf.mxu1 }
 0x1d2   : > { %v831_v50 = vadd.f32 %v1573_v34, %v1595_v51 }
 0x1d3   : > { %v1328_v52 = vpop.f32.mrf.mxu1 }
 0x1d4   : > { %v852_v16 = vadd.f32 %v1328_v52, %v1573_v34 }
 0x1d5   : > { %v843_v53 = vpop.f32.mrf.mxu1 }
 0x1d6   : > { %v936_v22 = vmax.f32 %v852_v16, 0.0  ;;  %v844_v32 = vadd.f32 %v1573_v34, %v843_v53  ;;  %v836_v53 = vadd.f32 %v1587_v44, %v1573_v34  ;;  %v828_v44 = vadd.f32 %v1573_v34, %v1591_v48 }
 0x1d7   : > { %v1329_v54 = vpop.f32.mrf.mxu1 }
 0x1d8   : > { %v855_v14 = vadd.f32 %v1329_v54, %v1573_v34  ;;  %v934_v42 = vmax.f32 %v844_v32, 0.0 }
 0x1d9   : > { %v846_v55 = vpop.f32.mrf.mxu1 }
 0x1da   : > { %v937_v19 = vmax.f32 %v855_v14, 0.0  ;;  %v847_v25 = vadd.f32 %v1573_v34, %v846_v55  ;;  %v933_v55 = vmax.f32 %v839_v45, 0.0 }
 0x1db   : > { %v1332_v56 = vpop.f32.mrf.mxu1 }
 0x1dc   : > { %v868_v58 = vadd.f32 %v1332_v56, %v1573_v34  ;;  %v962_v27 = vpack.c.bf16 %v937_v19, %v936_v22  ;;  %v935_v38 = vmax.f32 %v847_v25, 0.0  ;;  %v987_v19 = vsel %vm973_vm0, %v1589_v46, 0 }
 0x1dd   : > { %v859_v57 = vpop.f32.mrf.mxu1  ;;  %v978_v46 = vsel %vm973_vm0, %v1581_v35, 0 }
 0x1de   : > { %v860_v60 = vadd.f32 %v1573_v34, %v859_v57  ;;  %v940_v63 = vmax.f32 %v868_v58, 0.0  ;;  %v999_v41 = vsel %vm973_vm0, %v962_v27, 0  ;;  %v961_v47 = vpack.c.bf16 %v935_v38, %v934_v42 }
 0x1df   : > { %v1333_v59 = vpop.f32.mrf.mxu1 }
 0x1e0   : > { %v871_v61 = vadd.f32 %v1333_v59, %v1573_v34  ;;  %v938_v3 = vmax.f32 %v860_v60, 0.0  ;;  %v996_v58 = vsel %vm973_vm0, %v961_v47, 0  ;;  %v932_v59 = vmax.f32 %v836_v53, 0.0 }
 0x1e1   : > { %v862_v62 = vpop.f32.mrf.mxu1 }
 0x1e2   : > { %v941_v0 = vmax.f32 %v871_v61, 0.0  ;;  %v863_v1 = vadd.f32 %v1573_v34, %v862_v62  ;;  %v960_v61 = vpack.c.bf16 %v933_v55, %v932_v59 }
 0x1e3   : > { %v1601_v2 = vpop.f32.mrf.mxu1 }
 0x1e4   : > { %v1603_v4 = vpack.c.bf16 %v941_v0, %v940_v63  ;;  %v939_v5 = vmax.f32 %v863_v1, 0.0  ;;  %v931_v0 = vmax.f32 %v831_v50, 0.0 }
 0x1e5   : > { %v1605_v6 = vpop.f32.mrf.mxu1 }
 0x1e6   : > { %v1607_v7 = vpack.c.bf16 %v939_v5, %v938_v3  ;;  %v993_v5 = vsel %vm973_vm0, %v960_v61, 0 }
 0x1e7   : > { %v1337_v8 = vpop.f32.mrf.mxu1 }
 0x1e8   : > { %v887_v1 = vadd.f32 %v1337_v8, %v1573_v34  ;;  %v876_v8 = vadd.f32 %v1573_v34, %v1605_v6 }
 0x1e9   : > { %v1609_v9 = vpop.f32.mrf.mxu1 }
 0x1ea   : > { %v945_v51 = vmax.f32 %v887_v1, 0.0  ;;  %v879_v48 = vadd.f32 %v1573_v34, %v1609_v9  ;;  %v984_v9 = vsel %vm973_vm0, %v1593_v49, 0  ;;  %v1403_v49 = vmov 1966171168  }
 0x1eb   : > { %v1340_v10 = vpop.f32.mrf.mxu1  ;;  %v1070_v6 = vunpack.c.l.s4 %v1403_v49 }
 0x1ec   : > { %v900_v43 = vadd.f32 %v1340_v10, %v1573_v34  ;;  %v930_v10 = vmax.f32 %v828_v44, 0.0  ;;  %v943_v16 = vmax.f32 %v879_v48, 0.0 }
 0x1ed   : > { %v891_v11 = vpop.f32.mrf.mxu1 }
 0x1ee   : > { %v948_v54 = vmax.f32 %v900_v43, 0.0  ;;  %v892_v60 = vadd.f32 %v1573_v34, %v891_v11  ;;  %v884_v11 = vadd.f32 %v1601_v2, %v1573_v34 }
 0x1ef   : > { %v1341_v12 = vpop.f32.mrf.mxu1 }
 0x1f0   : > { %v903_v39 = vadd.f32 %v1341_v12, %v1573_v34  ;;  %v946_v63 = vmax.f32 %v892_v60, 0.0  ;;  %v959_v12 = vpack.c.bf16 %v931_v0, %v930_v10 }
 0x1f1   : > { %v894_v13 = vpop.f32.mrf.mxu1 }
 0x1f2   : > { %v949_v52 = vmax.f32 %v903_v39, 0.0  ;;  %v895_v57 = vadd.f32 %v1573_v34, %v894_v13  ;;  %v944_v13 = vmax.f32 %v884_v11, 0.0 }
 0x1f3   : > { %v1344_v15 = vpop.f32.mrf.mxu1 }
 0x1f4   : > { %v916_v20 = vadd.f32 %v1344_v15, %v1573_v34  ;;  %v968_v56 = vpack.c.bf16 %v949_v52, %v948_v54  ;;  %v947_v62 = vmax.f32 %v895_v57, 0.0  ;;  %v966_v14 = vpack.c.bf16 %v945_v51, %v944_v13 }
 0x1f5   : > { %v907_v17 = vpop.f32.mrf.mxu1  ;;  %v990_v15 = vsel %vm973_vm0, %v959_v12, 0 }
 0x1f6   : > { %v908_v23 = vadd.f32 %v1573_v34, %v907_v17  ;;  %v952_v28 = vmax.f32 %v916_v20, 0.0  ;;  %v967_v3 = vpack.c.bf16 %v947_v62, %v946_v63  ;;  %v942_v17 = vmax.f32 %v876_v8, 0.0 }
 0x1f7   : > { %v1345_v21 = vpop.f32.mrf.mxu1  ;;  %v1072_v20 = vlaneseq }
 0x1f8   : > { %v919_v24 = vadd.f32 %v1345_v21, %v1573_v34  ;;  %v950_v33 = vmax.f32 %v908_v23, 0.0  ;;  %v965_v2 = vpack.c.bf16 %v943_v16, %v942_v17 }
 0x1f9   : > { %v910_v26 = vpop.f32.mrf.mxu1  ;;  %v1073_v21 = vshrl.u32 %v1072_v20, 7  ;;  %vm1086_vm1 = vcmp.lt.s32.totalorder %v1072_v20, 256 }
 0x1fa   : > { %v953_v29 = vmax.f32 %v919_v24, 0.0  ;;  %v911_v30 = vadd.f32 %v1573_v34, %v910_v26  ;;  %v981_v34 = vsel %vm973_vm0, %v1579_v31, 0  ;;  %v972_v31 = vstv %s971_s25 }
 0x1fc   : > { %v970_v36 = vpack.c.bf16 %v953_v29, %v952_v28  ;;  %v951_v37 = vmax.f32 %v911_v30, 0.0 }
 0x1fe   : > { %v969_v40 = vpack.c.bf16 %v951_v37, %v950_v33  ;;  %1346 = vmatprep.subr.msk.bf16.mxu0 %vm973_vm0, %v970_v36 }
 0x1ff   : > { %1233 = vmatpush3.bf16.xpose.msra.mxu0 %v999_v41 }
 0x200   : > { %1347 = vmatprep.subr.msk.bf16.mxu0 %vm973_vm0, %v969_v40 }
 0x207   : > { %1235 = vmatpush3.bf16.xpose.msra.mxu0 %v996_v58 }
 0x208   : > { %1348 = vmatprep.subr.msk.bf16.mxu0 %vm973_vm0, %v968_v56 }
 0x20f   : > { %1237 = vmatpush3.bf16.xpose.msra.mxu0 %v993_v5 }
 0x210   : > { %1349 = vmatprep.subr.msk.bf16.mxu0 %vm973_vm0, %v967_v3 }
 0x217   : > { %1239 = vmatpush3.bf16.xpose.msra.mxu0 %v990_v15 }
 0x218   : > { %1350 = vmatprep.subr.msk.bf16.mxu0 %vm973_vm0, %v966_v14 }
 0x21f   : > { %1241 = vmatpush3.bf16.xpose.msra.mxu0 %v987_v19 }
 0x220   : > { %1351 = vmatprep.subr.msk.bf16.mxu0 %vm973_vm0, %v965_v2 }
 0x227   : > { %1243 = vmatpush3.bf16.xpose.msra.mxu0 %v984_v9 }
 0x228   : > { %1352 = vmatprep.subr.msk.bf16.mxu0 %vm973_vm0, %v1603_v4  ;;  %v1071_v4 = vunpack.c.0.s8 %v1070_v6 }
 0x22a   : > { %v1074_v25 = vsub.s32 %v1071_v4, %v1073_v21 }
 0x22f   : > { %1245 = vmatpush3.bf16.xpose.msra.mxu0 %v981_v34 }
 0x230   : > { %1353 = vmatprep.subr.msk.bf16.mxu0 %vm973_vm0, %v1607_v7 }
 0x237   : > { %1247 = vmatpush3.bf16.xpose.msra.mxu0 %v978_v46 }
 0x23e   : > { %1249 = vmatmul.mubr.msk.bf16.vlgmr.msra.gmra.mxu0 %vm973_vm0, %v1566_v18 }
 0x2fe   : > { %v1059_v22 = vpop.f32.mrf.mxu0 }
 0x2ff   : > { %v1060_v7 = vadd.f32 %v1059_v22, %v972_v31 }
 0x300   : > { %v1061_v23 = vpop.f32.mrf.mxu0 }
 0x301   : > { %v1062_v24 = vadd.f32 %v1061_v23, %v972_v31 }
 0x302   : > { %v1063_v35 = vpop.f32.mrf.mxu0 }
 0x303   : > { %v1068_v26 = vcombine.low %v1060_v7, %v1062_v24 }
 0x304   : > { %v1064_v27 = vpop.f32.mrf.mxu0 }
 0x305   : > { %v1075_v18 = vrot.slane %v1068_v26, %v1074_v25 }
 0x307   : > { %v1082_v28 = vrot.slane %v1075_v18, %v1074_v25 }
 0x309   : > { %1088 = vst.msk [vmem:[%s279_s30] sm:$0x3] %vm1086_vm1, %v1082_v28 }
 0x30a PF: > { %s18_s26 = sadd.s32 1, %s1401_s26  }
 0x30b   : > { %p15_p5 = scmp.ge.s32.totalorder %s18_s26, 4  }
 0x30d   :  { %17 = sbr.rel (!%p15_p5) target bundleno = 2 (0x2), region = 78 }

</bundles_post_ra>
